<compile_context>
chip_gen: v5e
topology: v5e:2x2
jax: 0.10.0
libtpu: 0.0.40
codegen_flags: <defaults>
</compile_context>

<pallas_src>
import math

import jax
import jax.numpy as jnp
from jax.experimental import pallas as pl
from jax.experimental.pallas import tpu as pltpu

LEAKY_SLOPE = 0.01   # nn.LeakyReLU default
BN_EPS = 1e-5        # nn.BatchNorm2d default

_LANE = 128
_ROW_ALIGN = 16                      # bf16 sublane packing (2 x f32 sublanes)
_STAT_SUBLANES = 8
_VMEM_TILE_BUDGET = 8 * 1024 * 1024  # bytes for double-buffered in+out tiles
_MAX_TILE_ROWS = 2048


# ---------------- Pallas kernels ----------------

def _convmm_kernel(p_ref, w_ref, y_ref, sum_ref, ssq_ref):
    """Packed-parity transposed-conv matmul (bf16 x bf16 -> f32) fused with
    BatchNorm batch-statistic accumulation.

    sum_ref / ssq_ref are (8, lanes) grid-resident accumulators; the per-tile
    partial sums are pure VPU adds (final cross-sublane reduce happens outside).
    """
    i = pl.program_id(0)

    @pl.when(i == 0)
    def _init():
        sum_ref[...] = jnp.zeros_like(sum_ref)
        ssq_ref[...] = jnp.zeros_like(ssq_ref)

    y = jnp.dot(p_ref[...], w_ref[...], preferred_element_type=jnp.float32)
    y_ref[...] = y

    rows, lanes = y.shape
    yg = y.reshape(rows // _STAT_SUBLANES, _STAT_SUBLANES, lanes)
    sum_ref[...] += jnp.sum(yg, axis=0)
    ssq_ref[...] += jnp.sum(yg * yg, axis=0)


def _bn_lrelu_kernel(y_ref, scale_ref, shift_ref, o_ref):
    """Fused BatchNorm affine (precomputed, lane-tiled scale/shift) + LeakyReLU."""
    z = y_ref[...] * scale_ref[...] + shift_ref[...]
    o_ref[...] = jnp.where(z >= 0, z, LEAKY_SLOPE * z)


# ---------------- helpers ----------------

def _cdiv(a, b):
    return -(-a // b)


def _lcm(a, b):
    return a * b // math.gcd(a, b)


def _pack_group(k4, c4):
    """Smallest G such that G*k4 and G*c4 are both multiples of the 128 lanes."""
    return _lcm(_LANE // math.gcd(k4, _LANE), _LANE // math.gcd(c4, _LANE))


def _pick_tile_rows(total_rows, bytes_per_row):
    """Largest 16-aligned row tile whose double-buffered in+out tiles fit budget."""
    t = _VMEM_TILE_BUDGET // (2 * bytes_per_row)
    t = max(_ROW_ALIGN, (min(_MAX_TILE_ROWS, int(t)) // _ROW_ALIGN) * _ROW_ALIGN)
    return min(t, _cdiv(total_rows, _ROW_ALIGN) * _ROW_ALIGN)


# ---------------- wrapper ----------------

def conv_transpose_block(x_nchw, w_t, bias, gamma, beta):
    """Forward of ConvTransposeBlock.

    x_nchw: (N, C_in, H, W) float32
    w_t:    (C_in, C_out, 3, 3)   PyTorch ConvTranspose2d weight layout
    bias:   (C_out,)              (cancelled exactly by train-mode BatchNorm)
    gamma, beta: (C_out,)         BatchNorm2d affine parameters
    Returns: (N, C_out, 2H, 2W) float32
    """
    del bias  # train-mode BN subtracts the batch mean, so the conv bias cancels.

    N, C_in, H, W = x_nchw.shape
    C_out = w_t.shape[1]
    H_out, W_out = 2 * H, 2 * W
    K4, C4 = 4 * C_in, 4 * C_out

    G = _pack_group(K4, C4)            # spatial positions packed per matrix row
    GK, GC = G * K4, G * C4            # both multiples of 128 (lane-dense)
    M = N * H * W                      # input spatial positions
    Mg = _cdiv(M, G)                   # packed rows

    # ---------- XLA glue: the 4 shifted input views, packed & bf16 ----------
    x = jnp.transpose(x_nchw, (0, 2, 3, 1)).astype(jnp.float32)         # NHWC
    xp = jnp.pad(x, ((0, 0), (0, 1), (0, 1), (0, 0)))
    x4 = jnp.concatenate(
        [xp[:, :H, :W, :],              # x[r,   c  ]
         xp[:, :H, 1:W + 1, :],         # x[r,   c+1]
         xp[:, 1:H + 1, :W, :],         # x[r+1, c  ]
         xp[:, 1:H + 1, 1:W + 1, :]],   # x[r+1, c+1]
        axis=-1).astype(jnp.bfloat16)                                    # (N,H,W,4*C_in)

    # ---------- per-parity weight, block-diagonal expanded for packing -------
    w = w_t.astype(jnp.float32)
    z = jnp.zeros((C_in, C_out), jnp.float32)
    # columns: (even,even) (even,odd) (odd,even) (odd,odd) output parities
    w_small = jnp.block([
        [w[:, :, 1, 1], w[:, :, 1, 2], w[:, :, 2, 1], w[:, :, 2, 2]],   # x[r,  c  ]
        [z,             w[:, :, 1, 0], z,             w[:, :, 2, 0]],   # x[r,  c+1]
        [z,             z,             w[:, :, 0, 1], w[:, :, 0, 2]],   # x[r+1,c  ]
        [z,             z,             z,             w[:, :, 0, 0]],   # x[r+1,c+1]
    ])                                                                   # (K4, C4)
    w_big = jnp.kron(jnp.eye(G, dtype=jnp.float32), w_small).astype(jnp.bfloat16)

    # ---------- row-pad & pack so every operand is lane-dense ---------------
    tm = _pick_tile_rows(Mg, GK * 2 + GC * 4)
    Mg_pad = _cdiv(Mg, tm) * tm
    p = x4.reshape(M, K4)
    p = jnp.pad(p, ((0, Mg_pad * G - M), (0, 0))).reshape(Mg_pad, GK)

    grid = (Mg_pad // tm,)

    # ---------- kernel 1: conv matmul + BN batch statistics -----------------
    y0, psum, pssq = pl.pallas_call(
        _convmm_kernel,
        out_shape=(jax.ShapeDtypeStruct((Mg_pad, GC), jnp.float32),
                   jax.ShapeDtypeStruct((_STAT_SUBLANES, GC), jnp.float32),
                   jax.ShapeDtypeStruct((_STAT_SUBLANES, GC), jnp.float32)),
        grid=grid,
        in_specs=[pl.BlockSpec((tm, GK), lambda i: (i, 0)),
                  pl.BlockSpec((GK, GC), lambda i: (0, 0))],
        out_specs=(pl.BlockSpec((tm, GC), lambda i: (i, 0)),
                   pl.BlockSpec((_STAT_SUBLANES, GC), lambda i: (0, 0)),
                   pl.BlockSpec((_STAT_SUBLANES, GC), lambda i: (0, 0))),
        compiler_params=pltpu.CompilerParams(
            dimension_semantics=("arbitrary",),        # resident stat accumulators
            vmem_limit_bytes=32 * 1024 * 1024),
    )(p, w_big)

    # ---------- tiny per-channel BN math (train-mode batch statistics) ------
    # lane ordering of the packed output is (pack-group g, parity p, channel co)
    ch_sum = jnp.sum(psum, axis=0).reshape(G, 4, C_out).sum(axis=(0, 1))
    ch_ssq = jnp.sum(pssq, axis=0).reshape(G, 4, C_out).sum(axis=(0, 1))
    count = jnp.float32(N * H_out * W_out)
    mean0 = ch_sum / count                                   # E[conv] w/o bias
    var = jnp.maximum(ch_ssq / count - mean0 * mean0, 0.0)   # Var(conv+bias)=Var(conv)
    scale_c = gamma.astype(jnp.float32) * jax.lax.rsqrt(var + BN_EPS)
    shift_c = beta.astype(jnp.float32) - scale_c * mean0     # conv bias cancels
    scale_row = jnp.tile(scale_c, G * 4)[None, :]            # (1, GC), lane-tiled
    shift_row = jnp.tile(shift_c, G * 4)[None, :]

    # ---------- kernel 2: lane-dense fused BN affine + LeakyReLU ------------
    out_packed = pl.pallas_call(
        _bn_lrelu_kernel,
        out_shape=jax.ShapeDtypeStruct((Mg_pad, GC), jnp.float32),
        grid=grid,
        in_specs=[pl.BlockSpec((tm, GC), lambda i: (i, 0)),
                  pl.BlockSpec((1, GC), lambda i: (0, 0)),
                  pl.BlockSpec((1, GC), lambda i: (0, 0))],
        out_specs=pl.BlockSpec((tm, GC), lambda i: (i, 0)),
        input_output_aliases={0: 0},                          # reuse y0's HBM buffer
        compiler_params=pltpu.CompilerParams(
            dimension_semantics=("parallel",),
            vmem_limit_bytes=32 * 1024 * 1024),
    )(y0, scale_row, shift_row)

    # ---------- unpack parities / channels back to NCHW ---------------------
    # TODO(synk): fold this final relayout into kernel 2's out_spec (write NCHW
    # blocks directly) to save one more HBM round trip of the output.
    out = out_packed.reshape(Mg_pad * G, C4)[:M]
    out = out.reshape(N, H, W, 2, 2, C_out)            # (n, r, c, ph, pw, co)
    out = jnp.transpose(out, (0, 5, 1, 3, 2, 4))       # (n, co, r, ph, c, pw)
    return out.reshape(N, C_out, H_out, W_out)


conv_transpose_block_jit = jax.jit(conv_transpose_block)


# ---------------- reference (bf16 conv operands, like the kernel) ----------------

def _reference(x_nchw, w_t, bias, gamma, beta):
    w_conv = jnp.transpose(jnp.flip(w_t, axis=(2, 3)), (1, 0, 2, 3))   # OIHW
    y = jax.lax.conv_general_dilated(
        x_nchw.astype(jnp.bfloat16), w_conv.astype(jnp.bfloat16),
        window_strides=(1, 1), padding=((1, 2), (1, 2)),
        lhs_dilation=(2, 2),
        dimension_numbers=('NCHW', 'OIHW', 'NCHW'),
        preferred_element_type=jnp.float32)
    y = y + bias[None, :, None, None]
    mean = y.mean(axis=(0, 2, 3), keepdims=True)
    var = ((y - mean) ** 2).mean(axis=(0, 2, 3), keepdims=True)        # biased
    yhat = (y - mean) / jnp.sqrt(var + BN_EPS)
    z = gamma[None, :, None, None] * yhat + beta[None, :, None, None]
    return jnp.where(z >= 0, z, LEAKY_SLOPE * z)


if __name__ == "__main__":
    key = jax.random.PRNGKey(0)
    kx, kw, kb, kg, kbt = jax.random.split(key, 5)

    N, C_in, H, W = 2, 4, 16, 16
    C_out = 8

    x = jax.random.normal(kx, (N, C_in, H, W), jnp.float32)
    w_t = 0.1 * jax.random.normal(kw, (C_in, C_out, 3, 3), jnp.float32)
    bias = 0.1 * jax.random.normal(kb, (C_out,), jnp.float32)
    gamma = 1.0 + 0.1 * jax.random.normal(kg, (C_out,), jnp.float32)
    beta = 0.1 * jax.random.normal(kbt, (C_out,), jnp.float32)

    out = jax.block_until_ready(conv_transpose_block_jit(x, w_t, bias, gamma, beta))
    ref = jax.block_until_ready(_reference(x, w_t, bias, gamma, beta))

    assert out.shape == (N, C_out, 2 * H, 2 * W), out.shape
    err = float(jnp.max(jnp.abs(out - ref)))
    if err > 5e-3:   # both paths use bf16 conv operands with f32 accumulation
        raise AssertionError(f"mismatch vs reference, max abs err = {err}")
    print("KERNEL_OK")
</pallas_src>

<mosaic_0001>
module attributes {stable_mosaic.version = 11 : i64} {
  func.func @_convmm_kernel(%arg0: i32, %arg1: memref<64x128xbf16, #tpu.memory_space<vmem>>, %arg2: memref<128x256xbf16, #tpu.memory_space<vmem>>, %arg3: memref<64x256xf32, #tpu.memory_space<vmem>>, %arg4: memref<8x256xf32, #tpu.memory_space<vmem>>, %arg5: memref<8x256xf32, #tpu.memory_space<vmem>>) attributes {dimension_semantics = [#tpu.dimension_semantics<arbitrary>], iteration_bounds = array<i64: 1>, scalar_prefetch = 0 : i64, scratch_operands = 0 : i64, tpu.core_type = #tpu.core_type<tc>, window_params = [{transform_indices = @transform_0, window_bounds = array<i64: 64, 128>}, {pipeline_mode = #tpu.pipeline_mode<synchronous>, transform_indices = @transform_1, window_bounds = array<i64: 128, 256>}, {transform_indices = @transform_2, window_bounds = array<i64: 64, 256>}, {pipeline_mode = #tpu.pipeline_mode<synchronous>, transform_indices = @transform_3, window_bounds = array<i64: 8, 256>}, {pipeline_mode = #tpu.pipeline_mode<synchronous>, transform_indices = @transform_4, window_bounds = array<i64: 8, 256>}]} {
    %c0_i32 = arith.constant 0 : i32
    %0 = arith.cmpi eq, %arg0, %c0_i32 : i32
    %1 = arith.extui %0 : i1 to i32
    %c0_i32_0 = arith.constant 0 : i32
    %2 = arith.cmpi ne, %1, %c0_i32_0 : i32
    scf.if %2 {
      %cst_16 = arith.constant 0.000000e+00 : f32
      %17 = vector.broadcast %cst_16 : f32 to vector<8x256xf32>
      %c0_17 = arith.constant 0 : index
      %c0_18 = arith.constant 0 : index
      %18 = vector.load %arg4[%c0_17, %c0_18] : memref<8x256xf32, #tpu.memory_space<vmem>>, vector<8x256xf32>
      tpu.vector_store %arg4[%c0_17, %c0_18], %17 {strides = array<i32>} : memref<8x256xf32, #tpu.memory_space<vmem>>, vector<8x256xf32>,
      %cst_19 = arith.constant 0.000000e+00 : f32
      %19 = vector.broadcast %cst_19 : f32 to vector<8x256xf32>
      %c0_20 = arith.constant 0 : index
      %c0_21 = arith.constant 0 : index
      %20 = vector.load %arg5[%c0_20, %c0_21] : memref<8x256xf32, #tpu.memory_space<vmem>>, vector<8x256xf32>
      tpu.vector_store %arg5[%c0_20, %c0_21], %19 {strides = array<i32>} : memref<8x256xf32, #tpu.memory_space<vmem>>, vector<8x256xf32>,
    } else {
    }
    %c0 = arith.constant 0 : index
    %c0_1 = arith.constant 0 : index
    %3 = vector.load %arg1[%c0, %c0_1] : memref<64x128xbf16, #tpu.memory_space<vmem>>, vector<64x128xbf16>
    %c0_2 = arith.constant 0 : index
    %c0_3 = arith.constant 0 : index
    %4 = vector.load %arg2[%c0_2, %c0_3] : memref<128x256xbf16, #tpu.memory_space<vmem>>, vector<128x256xbf16>
    %cst = arith.constant dense<0.000000e+00> : vector<64x256xf32>
    %5 = tpu.matmul %3, %4, %cst {dimension_numbers = #tpu.dot_dimension_numbers<[1], [0], [0], [1], [0, 0, 1, 1], [], []>} : vector<64x128xbf16>, vector<128x256xbf16>, vector<64x256xf32> -> vector<64x256xf32>
    %c0_4 = arith.constant 0 : index
    %c0_5 = arith.constant 0 : index
    %6 = vector.load %arg3[%c0_4, %c0_5] : memref<64x256xf32, #tpu.memory_space<vmem>>, vector<64x256xf32>
    tpu.vector_store %arg3[%c0_4, %c0_5], %5 {strides = array<i32>} : memref<64x256xf32, #tpu.memory_space<vmem>>, vector<64x256xf32>,
    %7 = vector.shape_cast %5 : vector<64x256xf32> to vector<8x8x256xf32>
    %c0_6 = arith.constant 0 : index
    %c0_7 = arith.constant 0 : index
    %8 = vector.load %arg4[%c0_6, %c0_7] : memref<8x256xf32, #tpu.memory_space<vmem>>, vector<8x256xf32>
    %cst_8 = arith.constant dense<0.000000e+00> : vector<8x256xf32>
    %9 = vector.multi_reduction <add>, %7, %cst_8 [0] : vector<8x8x256xf32> to vector<8x256xf32>
    %10 = arith.addf %8, %9 : vector<8x256xf32>
    %c0_9 = arith.constant 0 : index
    %c0_10 = arith.constant 0 : index
    %11 = vector.load %arg4[%c0_9, %c0_10] : memref<8x256xf32, #tpu.memory_space<vmem>>, vector<8x256xf32>
    tpu.vector_store %arg4[%c0_9, %c0_10], %10 {strides = array<i32>} : memref<8x256xf32, #tpu.memory_space<vmem>>, vector<8x256xf32>,
    %c0_11 = arith.constant 0 : index
    %c0_12 = arith.constant 0 : index
    %12 = vector.load %arg5[%c0_11, %c0_12] : memref<8x256xf32, #tpu.memory_space<vmem>>, vector<8x256xf32>
    %13 = arith.mulf %7, %7 : vector<8x8x256xf32>
    %cst_13 = arith.constant dense<0.000000e+00> : vector<8x256xf32>
    %14 = vector.multi_reduction <add>, %13, %cst_13 [0] : vector<8x8x256xf32> to vector<8x256xf32>
    %15 = arith.addf %12, %14 : vector<8x256xf32>
    %c0_14 = arith.constant 0 : index
    %c0_15 = arith.constant 0 : index
    %16 = vector.load %arg5[%c0_14, %c0_15] : memref<8x256xf32, #tpu.memory_space<vmem>>, vector<8x256xf32>
    tpu.vector_store %arg5[%c0_14, %c0_15], %15 {strides = array<i32>} : memref<8x256xf32, #tpu.memory_space<vmem>>, vector<8x256xf32>,
    return
  }
  func.func @transform_0(%arg0: i32) -> (i32, i32) {
    %c0_i32 = arith.constant 0 : i32
    %c0_i32_0 = arith.constant 0 : i32
    return %arg0, %c0_i32 : i32, i32
  }
  func.func @transform_1(%arg0: i32) -> (i32, i32) {
    %c0_i32 = arith.constant 0 : i32
    %c0_i32_0 = arith.constant 0 : i32
    %c0_i32_1 = arith.constant 0 : i32
    return %c0_i32, %c0_i32_0 : i32, i32
  }
  func.func @transform_2(%arg0: i32) -> (i32, i32) {
    %c0_i32 = arith.constant 0 : i32
    %c0_i32_0 = arith.constant 0 : i32
    return %arg0, %c0_i32 : i32, i32
  }
  func.func @transform_3(%arg0: i32) -> (i32, i32) {
    %c0_i32 = arith.constant 0 : i32
    %c0_i32_0 = arith.constant 0 : i32
    %c0_i32_1 = arith.constant 0 : i32
    return %c0_i32, %c0_i32_0 : i32, i32
  }
  func.func @transform_4(%arg0: i32) -> (i32, i32) {
    %c0_i32 = arith.constant 0 : i32
    %c0_i32_0 = arith.constant 0 : i32
    %c0_i32_1 = arith.constant 0 : i32
    return %c0_i32, %c0_i32_0 : i32, i32
  }
}

module attributes {stable_mosaic.version = 11 : i64} {
  func.func @_bn_lrelu_kernel(%arg0: i32, %arg1: memref<64x256xf32, #tpu.memory_space<vmem>>, %arg2: memref<1x256xf32, #tpu.memory_space<vmem>>, %arg3: memref<1x256xf32, #tpu.memory_space<vmem>>, %arg4: memref<64x256xf32, #tpu.memory_space<vmem>>) attributes {dimension_semantics = [#tpu.dimension_semantics<parallel>], iteration_bounds = array<i64: 1>, scalar_prefetch = 0 : i64, scratch_operands = 0 : i64, tpu.core_type = #tpu.core_type<tc>, window_params = [{transform_indices = @transform_0, window_bounds = array<i64: 64, 256>}, {pipeline_mode = #tpu.pipeline_mode<synchronous>, transform_indices = @transform_1, window_bounds = array<i64: 1, 256>}, {pipeline_mode = #tpu.pipeline_mode<synchronous>, transform_indices = @transform_2, window_bounds = array<i64: 1, 256>}, {transform_indices = @transform_3, window_bounds = array<i64: 64, 256>}]} {
    %c0 = arith.constant 0 : index
    %c0_0 = arith.constant 0 : index
    %0 = vector.load %arg1[%c0, %c0_0] : memref<64x256xf32, #tpu.memory_space<vmem>>, vector<64x256xf32>
    %c0_1 = arith.constant 0 : index
    %c0_2 = arith.constant 0 : index
    %1 = vector.load %arg2[%c0_1, %c0_2] : memref<1x256xf32, #tpu.memory_space<vmem>>, vector<1x256xf32>
    %2 = vector.broadcast %1 : vector<1x256xf32> to vector<64x256xf32>
    %3 = arith.mulf %0, %2 : vector<64x256xf32>
    %c0_3 = arith.constant 0 : index
    %c0_4 = arith.constant 0 : index
    %4 = vector.load %arg3[%c0_3, %c0_4] : memref<1x256xf32, #tpu.memory_space<vmem>>, vector<1x256xf32>
    %5 = vector.broadcast %4 : vector<1x256xf32> to vector<64x256xf32>
    %6 = arith.addf %3, %5 : vector<64x256xf32>
    %cst = arith.constant 0.000000e+00 : f32
    %7 = vector.broadcast %cst : f32 to vector<64x256xf32>
    %8 = arith.cmpf oge, %6, %7 : vector<64x256xf32>
    %cst_5 = arith.constant 0.00999999977 : f32
    %9 = vector.broadcast %cst_5 : f32 to vector<64x256xf32>
    %10 = arith.mulf %9, %6 : vector<64x256xf32>
    %11 = arith.select %8, %6, %10 : vector<64x256xi1>, vector<64x256xf32>
    %c0_6 = arith.constant 0 : index
    %c0_7 = arith.constant 0 : index
    %12 = vector.load %arg4[%c0_6, %c0_7] : memref<64x256xf32, #tpu.memory_space<vmem>>, vector<64x256xf32>
    tpu.vector_store %arg4[%c0_6, %c0_7], %11 {strides = array<i32>} : memref<64x256xf32, #tpu.memory_space<vmem>>, vector<64x256xf32>,
    return
  }
  func.func @transform_0(%arg0: i32) -> (i32, i32) {
    %c0_i32 = arith.constant 0 : i32
    %c0_i32_0 = arith.constant 0 : i32
    return %arg0, %c0_i32 : i32, i32
  }
  func.func @transform_1(%arg0: i32) -> (i32, i32) {
    %c0_i32 = arith.constant 0 : i32
    %c0_i32_0 = arith.constant 0 : i32
    %c0_i32_1 = arith.constant 0 : i32
    return %c0_i32, %c0_i32_0 : i32, i32
  }
  func.func @transform_2(%arg0: i32) -> (i32, i32) {
    %c0_i32 = arith.constant 0 : i32
    %c0_i32_0 = arith.constant 0 : i32
    %c0_i32_1 = arith.constant 0 : i32
    return %c0_i32, %c0_i32_0 : i32, i32
  }
  func.func @transform_3(%arg0: i32) -> (i32, i32) {
    %c0_i32 = arith.constant 0 : i32
    %c0_i32_0 = arith.constant 0 : i32
    return %arg0, %c0_i32 : i32, i32
  }
}

</mosaic_0001>

<bundles_post_ra>
// kernel: tile.18
= control target key start
LH: loop header
LB: loop body
LE: loop exit
PB: predicated region body
PF: predicated region fallthrough
CT: control target
= control target key end

     0   :  { %s40_s0 = inlined_call_operand.vmem [shape: f32[8], index: 0, kind: input, shape index: {}]   ;;  %s41_s1 = inlined_call_operand.vmem [shape: f32[32,8], index: 1, kind: output, shape index: {}]  }
   0x1   :  { %v4_v0 = vld [vmem:[%s40_s0] ss:$0 sm:$0xff] }
   0x2   :  { %5 = vst [vmem:[%s41_s1] sm:$0xff] %v4_v0 }
   0x3   :  { %12 = vst [vmem:[%s41_s1 + $0x8] sm:$0xff] %v4_v0 }
   0x4   :  { %13 = vst [vmem:[%s41_s1 + $0x10] sm:$0xff] %v4_v0 }
   0x5   :  { %14 = vst [vmem:[%s41_s1 + $0x18] sm:$0xff] %v4_v0 }

// kernel: tile.19
= control target key start
LH: loop header
LB: loop body
LE: loop exit
PB: predicated region body
PF: predicated region fallthrough
CT: control target
= control target key end

     0   :  { %s7_s6 = smov 3  ;;  %s21_s9 = smov 3  ;;  %vm4_vm0 = vcmask 64512   ;;  %vm11_vm1 = vcmask 1048512   ;;  %vm18_vm2 = vcmask 982912   ;;  %vm25_vm3 = vcmask 917312   ;;  %s233_s0 = inlined_call_operand.vmem [shape: f32[32,8], index: 0, kind: input, shape index: {}]   ;;  %s234_s1 = inlined_call_operand.vmem [shape: f32[1,256], index: 1, kind: output, shape index: {}]  }
   0x1   :  { %v123_v0 = vld [vmem:[%s233_s0 + $0xf] ss:$16 sm:%s7_s6]   ;;  %s154_s10 = smov 120   ;;  %v125_v1 = vld [vmem:[%s233_s0 + $0xd] ss:$16 sm:%s21_s9]   ;;  %s155_s13 = smov 104  }
   0x2   :  { %9 = vrot.lane.b32.xlu0 %v123_v0, %s154_s10  ;;  %23 = vrot.lane.b32.xlu1 %v125_v1, %s155_s13  ;;  %s14_s14 = smov 3  ;;  %s28_s15 = smov 3  ;;  %vm32_vm4 = vcmask 851712   ;;  %vm39_vm5 = vcmask 786112   ;;  %vm46_vm6 = vcmask 720512   ;;  %vm53_vm7 = vcmask 654912  }
   0x3   :  { %v124_v2 = vld [vmem:[%s233_s0 + $0xe] ss:$16 sm:%s14_s14]   ;;  %v126_v3 = vld [vmem:[%s233_s0 + $0xc] ss:$16 sm:%s28_s15]   ;;  %s35_s20 = smov 3  ;;  %s156_s23 = smov 112  }
   0x4   :  { %v127_v4 = vld [vmem:[%s233_s0 + $0xb] ss:$16 sm:%s35_s20]   ;;  %s157_s24 = smov 88   ;;  %s158_s25 = smov 96   ;;  %vm60_vm8 = vcmask 589312   ;;  %vm67_vm9 = vcmask 523712  }
   0x5   :  { %37 = vrot.lane.b32.xlu2 %v127_v4, %s157_s24  ;;  %s49_s26 = smov 3  ;;  %s42_s27 = smov 3  ;;  %vm74_vm10 = vcmask 458112   ;;  %vm81_vm11 = vcmask 392512   ;;  %vm88_vm12 = vcmask 326912   ;;  %vm95_vm13 = vcmask 261312  }
   0x6   :  { %s56_s28 = smov 3  ;;  %v129_v5 = vld [vmem:[%s233_s0 + $0x9] ss:$16 sm:%s49_s26]   ;;  %v128_v6 = vld [vmem:[%s233_s0 + $0xa] ss:$16 sm:%s42_s27]   ;;  %s159_s6 = smov 72  }
   0x7   :  { %v130_v7 = vld [vmem:[%s233_s0 + $0x8] ss:$16 sm:%s56_s28]   ;;  %s160_s7 = smov 80   ;;  %s161_s8 = smov 64   ;;  %vm102_vm14 = vcmask 195712   ;;  %vm109_vm15 = vcmask 130112  }
   0x8   :  { %s70_s9 = smov 3  ;;  %s63_s10 = smov 3 }
   0x9   :  { %s77_s11 = smov 3  ;;  %v132_v8 = vld [vmem:[%s233_s0 + $0x6] ss:$16 sm:%s70_s9]   ;;  %v131_v9 = vld [vmem:[%s233_s0 + $0x7] ss:$16 sm:%s63_s10]   ;;  %s162_s18 = smov 48  }
   0xa   :  { %16 = vrot.lane.b32.xlu0 %v124_v2, %s156_s23  ;;  %30 = vrot.lane.b32.xlu1 %v126_v3, %s158_s25  ;;  %v133_v10 = vld [vmem:[%s233_s0 + $0x5] ss:$16 sm:%s77_s11]   ;;  %s163_s19 = smov 56   ;;  %s164_s20 = smov 40  }
   0xb   :  { %s91_s21 = smov 3  ;;  %s84_s22 = smov 3 }
   0xc   :  { %s98_s23 = smov 3  ;;  %v135_v11 = vld [vmem:[%s233_s0 + $0x3] ss:$16 sm:%s91_s21]   ;;  %v134_v12 = vld [vmem:[%s233_s0 + $0x4] ss:$16 sm:%s84_s22]   ;;  %s165_s30 = smov 24  }
   0xd   :  { %44 = vrot.lane.b32.xlu2 %v128_v6, %s160_s7  ;;  %v136_v13 = vld [vmem:[%s233_s0 + $0x2] ss:$16 sm:%s98_s23]   ;;  %s166_s2 = smov 32   ;;  %s167_s3 = smov 16  }
   0xe   :  { %s105_s4 = smov 3  ;;  %s168_s7 = smov 8  }
   0xf   :  { %v137_v14 = vld [vmem:[%s233_s0 + $0x1] ss:$16 sm:%s105_s4]  }
  0x12   :  { %51 = vrot.lane.b32.xlu0 %v129_v5, %s159_s6  ;;  %58 = vrot.lane.b32.xlu1 %v130_v7, %s161_s8  ;;  %s2_s8 = smov 3 }
  0x13   :  { %v3_v15 = vld [vmem:[%s233_s0] ss:$16 sm:%s2_s8]  }
  0x14   :  { %5 = vst.msk [vmem:[#allocation0] ss:$8 sm:$0x3] %vm4_vm0, %v3_v15  }
  0x15   :  { %65 = vrot.lane.b32.xlu2 %v131_v9, %s163_s19 }
  0x1a   :  { %72 = vrot.lane.b32.xlu0 %v132_v8, %s162_s18  ;;  %79 = vrot.lane.b32.xlu1 %v133_v10, %s164_s20 }
  0x1d   :  { %86 = vrot.lane.b32.xlu2 %v134_v12, %s166_s2 }
  0x22   :  { %93 = vrot.lane.b32.xlu0 %v135_v11, %s165_s30  ;;  %100 = vrot.lane.b32.xlu1 %v136_v13, %s167_s3 }
  0x25   :  { %107 = vrot.lane.b32.xlu2 %v137_v14, %s168_s7 }
  0x5f   :  { %v38_v16 = vpop.permute.xlu2 %37  }
  0x67   :  { %v45_v17 = vpop.permute.xlu2 %44  }
  0x6f   :  { %v66_v19 = vpop.permute.xlu2 %65  }
  0x74   :  { %v10_v18 = vpop.permute.xlu0 %9   ;;  %v24_v20 = vpop.permute.xlu1 %23  }
  0x75   :  { %12 = vst.msk [vmem:[#allocation0] ss:$8 sm:$0x3] %vm11_vm1, %v10_v18  }
  0x77   :  { %v87_v22 = vpop.permute.xlu2 %86  }
  0x7c   :  { %v17_v21 = vpop.permute.xlu0 %16   ;;  %v31_v23 = vpop.permute.xlu1 %30  }
  0x7d   :  { %19 = vst.msk [vmem:[#allocation0] ss:$8 sm:$0x3] %vm18_vm2, %v17_v21  }
  0x7e   :  { %26 = vst.msk [vmem:[#allocation0] ss:$8 sm:$0x3] %vm25_vm3, %v24_v20  }
  0x7f   :  { %33 = vst.msk [vmem:[#allocation0] ss:$8 sm:$0x3] %vm32_vm4, %v31_v23   ;;  %v108_v25 = vpop.permute.xlu2 %107  }
  0x80   :  { %40 = vst.msk [vmem:[#allocation0] ss:$8 sm:$0x3] %vm39_vm5, %v38_v16  }
  0x81   :  { %47 = vst.msk [vmem:[#allocation0] ss:$8 sm:$0x3] %vm46_vm6, %v45_v17  }
  0x84   :  { %v52_v24 = vpop.permute.xlu0 %51   ;;  %v59_v26 = vpop.permute.xlu1 %58  }
  0x85   :  { %54 = vst.msk [vmem:[#allocation0] ss:$8 sm:$0x3] %vm53_vm7, %v52_v24  }
  0x86   :  { %61 = vst.msk [vmem:[#allocation0] ss:$8 sm:$0x3] %vm60_vm8, %v59_v26  }
  0x87   :  { %68 = vst.msk [vmem:[#allocation0] ss:$8 sm:$0x3] %vm67_vm9, %v66_v19  }
  0x8c   :  { %v73_v27 = vpop.permute.xlu0 %72   ;;  %v80_v28 = vpop.permute.xlu1 %79  }
  0x8d   :  { %75 = vst.msk [vmem:[#allocation0] ss:$8 sm:$0x3] %vm74_vm10, %v73_v27  }
  0x8e   :  { %82 = vst.msk [vmem:[#allocation0] ss:$8 sm:$0x3] %vm81_vm11, %v80_v28  }
  0x8f   :  { %89 = vst.msk [vmem:[#allocation0] ss:$8 sm:$0x3] %vm88_vm12, %v87_v22  }
  0x94   :  { %v94_v29 = vpop.permute.xlu0 %93   ;;  %v101_v30 = vpop.permute.xlu1 %100  }
  0x95   :  { %96 = vst.msk [vmem:[#allocation0] ss:$8 sm:$0x3] %vm95_vm13, %v94_v29  }
  0x96   :  { %103 = vst.msk [vmem:[#allocation0] ss:$8 sm:$0x3] %vm102_vm14, %v101_v30  }
  0x97   :  { %110 = vst.msk [vmem:[#allocation0] ss:$8 sm:$0x3] %vm109_vm15, %v108_v25  }
  0x9e   :  { %v113_v31 = vld [vmem:[#allocation0] sm:$0x1]  ;;  %v118_v32 = vld [vmem:[#allocation0 + $0x8] sm:$0x1] }
  0x9f   :  { %116 = vst [vmem:[%s234_s1] sm:$0x1] %v113_v31 }
  0xa0   :  { %138 = vst [vmem:[%s234_s1 + $0x1] sm:$0x1] %v118_v32 }

// kernel: conv_transpose_block.3
= control target key start
LH: loop header
LB: loop body
LE: loop exit
PB: predicated region body
PF: predicated region fallthrough
CT: control target
= control target key end

     0   :  { %s304_s0 = inlined_call_operand.vmem [shape: f32[64,256], index: 0, kind: input, shape index: {}, may-alias: {0,3}]   ;;  %s305_s1 = inlined_call_operand.vmem [shape: f32[1,256], index: 1, kind: input, shape index: {}]   ;;  %s306_s2 = inlined_call_operand.vmem [shape: f32[1,256], index: 2, kind: input, shape index: {}]   ;;  %s307_s3 = inlined_call_operand.vmem [shape: f32[64,256], index: 3, kind: output, shape index: {}, may-alias: {0,3}]  }
   0x1   :  { %v14_v0 = vld [vmem:[%s304_s0] sm:$0xff]  ;;  %v15_v5 = vld [vmem:[%s304_s0 + $0x8] sm:$0xff]  ;;  %v16_v8 = vld [vmem:[%s304_s0 + $0x10] sm:$0xff] }
   0x2   :  { %v30_v1 = vld [vmem:[%s305_s1] sm:$0x3]  ;;  %v17_v9 = vld [vmem:[%s304_s0 + $0x18] sm:$0xff]  ;;  %v19_v11 = vld [vmem:[%s304_s0 + $0x28] sm:$0xff] }
   0x3   :  { %v52_v2 = vld [vmem:[%s306_s2] sm:$0x3]  ;;  %v171_v3 = vperm.slane %v30_v1, 0  ;;  %v178_v6 = vperm.slane %v30_v1, 1  ;;  %v20_v16 = vld [vmem:[%s304_s0 + $0x30] sm:$0xff]  ;;  %v21_v17 = vld [vmem:[%s304_s0 + $0x38] sm:$0xff] }
   0x4   :  { %v173_v4 = vperm.slane %v52_v2, 0  ;;  %v180_v7 = vperm.slane %v52_v2, 1  ;;  %v18_v10 = vld [vmem:[%s304_s0 + $0x20] sm:$0xff]  ;;  %v23_v38 = vld [vmem:[%s304_s0 + $0x48] sm:$0xff] }
   0x5   :  { %v36_v12 = vmul.f32 %v171_v3, %v14_v0  ;;  %v37_v13 = vmul.f32 %v178_v6, %v15_v5  ;;  %v38_v14 = vmul.f32 %v171_v3, %v16_v8  ;;  %v39_v15 = vmul.f32 %v178_v6, %v17_v9  ;;  %v22_v37 = vld [vmem:[%s304_s0 + $0x40] sm:$0xff] }
   0x6   :  { %v40_v18 = vmul.f32 %v171_v3, %v18_v10  ;;  %v41_v19 = vmul.f32 %v178_v6, %v19_v11  ;;  %v42_v20 = vmul.f32 %v171_v3, %v20_v16  ;;  %v43_v21 = vmul.f32 %v178_v6, %v21_v17 }
   0x7   :  { %v58_v22 = vadd.f32 %v173_v4, %v36_v12  ;;  %v59_v23 = vadd.f32 %v180_v7, %v37_v13  ;;  %v60_v24 = vadd.f32 %v173_v4, %v38_v14  ;;  %v61_v25 = vadd.f32 %v180_v7, %v39_v15 }
   0x8   :  { %v62_v26 = vadd.f32 %v173_v4, %v40_v18  ;;  %v63_v27 = vadd.f32 %v180_v7, %v41_v19  ;;  %v64_v28 = vadd.f32 %v173_v4, %v42_v20  ;;  %v65_v29 = vadd.f32 %v180_v7, %v43_v21 }
   0x9   :  { %vm74_vm0 = vcmp.ge.f32.partialorder %v58_v22, 0.0  ;;  %v90_v30 = vmul.f32 0.01, %v58_v22  ;;  %vm75_vm1 = vcmp.ge.f32.partialorder %v59_v23, 0.0  ;;  %v91_v31 = vmul.f32 0.01, %v59_v23 }
   0xa   :  { %vm76_vm2 = vcmp.ge.f32.partialorder %v60_v24, 0.0  ;;  %v92_v32 = vmul.f32 0.01, %v60_v24  ;;  %vm77_vm3 = vcmp.ge.f32.partialorder %v61_v25, 0.0  ;;  %v93_v33 = vmul.f32 0.01, %v61_v25 }
   0xb   :  { %v106_v34 = vsel %vm74_vm0, %v58_v22, %v90_v30  ;;  %v107_v35 = vsel %vm75_vm1, %v59_v23, %v91_v31  ;;  %vm78_vm4 = vcmp.ge.f32.partialorder %v62_v26, 0.0  ;;  %v94_v36 = vmul.f32 0.01, %v62_v26 }
   0xc   :  { %122 = vst [vmem:[%s307_s3] sm:$0xff] %v106_v34  ;;  %v108_v39 = vsel %vm76_vm2, %v60_v24, %v92_v32  ;;  %v109_v40 = vsel %vm77_vm3, %v61_v25, %v93_v33  ;;  %vm79_vm5 = vcmp.ge.f32.partialorder %v63_v27, 0.0  ;;  %v95_v41 = vmul.f32 0.01, %v63_v27 }
   0xd   :  { %v110_v45 = vsel %vm78_vm4, %v62_v26, %v94_v36  ;;  %vm80_vm6 = vcmp.ge.f32.partialorder %v64_v28, 0.0  ;;  %v96_v46 = vmul.f32 0.01, %v64_v28  ;;  %vm81_vm7 = vcmp.ge.f32.partialorder %v65_v29, 0.0 }
   0xe   :  { %v111_v48 = vsel %vm79_vm5, %v63_v27, %v95_v41  ;;  %v97_v49 = vmul.f32 0.01, %v65_v29  ;;  %v44_v50 = vmul.f32 %v171_v3, %v22_v37  ;;  %v45_v51 = vmul.f32 %v178_v6, %v23_v38 }
   0xf   :  { %v112_v53 = vsel %vm80_vm6, %v64_v28, %v96_v46 }
  0x10   :  { %v113_v57 = vsel %vm81_vm7, %v65_v29, %v97_v49  ;;  %v66_v58 = vadd.f32 %v173_v4, %v44_v50  ;;  %v67_v59 = vadd.f32 %v180_v7, %v45_v51 }
  0x12   :  { %vm82_vm8 = vcmp.ge.f32.partialorder %v66_v58, 0.0  ;;  %v98_v1 = vmul.f32 0.01, %v66_v58  ;;  %vm83_vm9 = vcmp.ge.f32.partialorder %v67_v59, 0.0  ;;  %v99_v5 = vmul.f32 0.01, %v67_v59 }
  0x13   :  { %v24_v42 = vld [vmem:[%s304_s0 + $0x50] sm:$0xff]  ;;  %v25_v43 = vld [vmem:[%s304_s0 + $0x58] sm:$0xff]  ;;  %v26_v44 = vld [vmem:[%s304_s0 + $0x60] sm:$0xff] }
  0x14   :  { %123 = vst [vmem:[%s307_s3 + $0x8] sm:$0xff] %v107_v35  ;;  %v46_v54 = vmul.f32 %v171_v3, %v24_v42  ;;  %v47_v55 = vmul.f32 %v178_v6, %v25_v43  ;;  %v48_v56 = vmul.f32 %v171_v3, %v26_v44  ;;  %v114_v10 = vsel %vm82_vm8, %v66_v58, %v98_v1 }
  0x15   :  { %v115_v12 = vsel %vm83_vm9, %v67_v59, %v99_v5 }
  0x16   :  { %v68_v61 = vadd.f32 %v173_v4, %v46_v54  ;;  %v69_v62 = vadd.f32 %v180_v7, %v47_v55  ;;  %v70_v63 = vadd.f32 %v173_v4, %v48_v56 }
  0x18   :  { %vm84_vm10 = vcmp.ge.f32.partialorder %v68_v61, 0.0  ;;  %v100_v8 = vmul.f32 0.01, %v68_v61  ;;  %vm85_vm11 = vcmp.ge.f32.partialorder %v69_v62, 0.0  ;;  %vm86_vm12 = vcmp.ge.f32.partialorder %v70_v63, 0.0 }
  0x19   :  { %v102_v14 = vmul.f32 0.01, %v70_v63 }
  0x1a   :  { %v116_v13 = vsel %vm84_vm10, %v68_v61, %v100_v8 }
  0x1b   :  { %v27_v47 = vld [vmem:[%s304_s0 + $0x68] sm:$0xff]  ;;  %v118_v17 = vsel %vm86_vm12, %v70_v63, %v102_v14 }
  0x1c   :  { %124 = vst [vmem:[%s307_s3 + $0x10] sm:$0xff] %v108_v39  ;;  %v49_v60 = vmul.f32 %v178_v6, %v27_v47 }
  0x1e   :  { %v71_v2 = vadd.f32 %v180_v7, %v49_v60 }
  0x20   :  { %vm87_vm13 = vcmp.ge.f32.partialorder %v71_v2, 0.0  ;;  %v103_v15 = vmul.f32 0.01, %v71_v2 }
  0x22   :  { %v119_v19 = vsel %vm87_vm13, %v71_v2, %v103_v15 }
  0x23   :  { %v28_v52 = vld [vmem:[%s304_s0 + $0x70] sm:$0xff] }
  0x24   :  { %125 = vst [vmem:[%s307_s3 + $0x18] sm:$0xff] %v109_v40  ;;  %v50_v0 = vmul.f32 %v171_v3, %v28_v52  ;;  %v101_v3 = vmul.f32 0.01, %v69_v62 }
  0x25   :  { %126 = vst [vmem:[%s307_s3 + $0x20] sm:$0xff] %v110_v45 }
  0x26   :  { %127 = vst [vmem:[%s307_s3 + $0x28] sm:$0xff] %v111_v48  ;;  %v72_v9 = vadd.f32 %v173_v4, %v50_v0  ;;  %v117_v4 = vsel %vm85_vm11, %v69_v62, %v101_v3 }
  0x27   :  { %128 = vst [vmem:[%s307_s3 + $0x30] sm:$0xff] %v112_v53 }
  0x28   :  { %129 = vst [vmem:[%s307_s3 + $0x38] sm:$0xff] %v113_v57  ;;  %vm88_vm14 = vcmp.ge.f32.partialorder %v72_v9, 0.0  ;;  %v104_v16 = vmul.f32 0.01, %v72_v9 }
  0x2a   :  { %v120_v20 = vsel %vm88_vm14, %v72_v9, %v104_v16 }
  0x2f   :  { %v29_v11 = vld [vmem:[%s304_s0 + $0x78] sm:$0xff] }
  0x30   :  { %130 = vst [vmem:[%s307_s3 + $0x40] sm:$0xff] %v114_v10  ;;  %v51_v18 = vmul.f32 %v178_v6, %v29_v11 }
  0x31   :  { %131 = vst [vmem:[%s307_s3 + $0x48] sm:$0xff] %v115_v12 }
  0x32   :  { %132 = vst [vmem:[%s307_s3 + $0x50] sm:$0xff] %v116_v13  ;;  %v73_v21 = vadd.f32 %v180_v7, %v51_v18 }
  0x33   :  { %133 = vst [vmem:[%s307_s3 + $0x58] sm:$0xff] %v117_v4 }
  0x34   :  { %134 = vst [vmem:[%s307_s3 + $0x60] sm:$0xff] %v118_v17  ;;  %vm89_vm15 = vcmp.ge.f32.partialorder %v73_v21, 0.0  ;;  %v105_v6 = vmul.f32 0.01, %v73_v21 }
  0x35   :  { %135 = vst [vmem:[%s307_s3 + $0x68] sm:$0xff] %v119_v19 }
  0x36   :  { %136 = vst [vmem:[%s307_s3 + $0x70] sm:$0xff] %v120_v20  ;;  %v121_v22 = vsel %vm89_vm15, %v73_v21, %v105_v6 }
  0x37   :  { %137 = vst [vmem:[%s307_s3 + $0x78] sm:$0xff] %v121_v22 }

// kernel: conv_transpose_block.2
= control target key start
LH: loop header
LB: loop body
LE: loop exit
PB: predicated region body
PF: predicated region fallthrough
CT: control target
= control target key end

     0   :  { %s602_s1 = inlined_call_operand.vmem [shape: bf16[128,256], index: 1, kind: input, shape index: {}]   ;;  %s603_s0 = inlined_call_operand.vmem [shape: bf16[64,128], index: 0, kind: input, shape index: {}]   ;;  %s604_s2 = inlined_call_operand.vmem [shape: f32[64,256], index: 2, kind: output, shape index: {0}]   ;;  %s605_s3 = inlined_call_operand.vmem [shape: f32[8,256], index: 3, kind: output, shape index: {1}]   ;;  %s606_s4 = inlined_call_operand.vmem [shape: f32[8,256], index: 4, kind: output, shape index: {2}]  }
   0x1   :  { %v366_v0 = vld [vmem:[%s602_s1 + $0x70] sm:$0xf]  ;;  %v391_v1 = vld [vmem:[%s602_s1 + $0x74] sm:$0xf0]  ;;  %v390_v2 = vld [vmem:[%s602_s1 + $0x74] sm:$0xf] }
   0x2   :  { %v367_v3 = vor.u32 %v391_v1, %v366_v0  ;;  %v368_v4 = vld [vmem:[%s602_s1 + $0x78] sm:$0xf0]  ;;  %v358_v5 = vld [vmem:[%s602_s1 + $0x60] sm:$0xf]  ;;  %v389_v6 = vld [vmem:[%s602_s1 + $0x64] sm:$0xf0] }
   0x3   :  { %v371_v7 = vor.u32 %v390_v2, %v368_v4  ;;  %v388_v8 = vld [vmem:[%s602_s1 + $0x64] sm:$0xf]  ;;  %v360_v9 = vld [vmem:[%s602_s1 + $0x68] sm:$0xf0]  ;;  %v359_v10 = vor.u32 %v389_v6, %v358_v5  ;;  %v350_v12 = vld [vmem:[%s602_s1 + $0x50] sm:$0xf] }
   0x4   :  { %150 = vmatpush.bf16.msra.mxu0 %v367_v3  ;;  %392 = vmatpush.bf16.msra.mxu2 %v367_v3  ;;  %v363_v11 = vor.u32 %v388_v8, %v360_v9  ;;  %v387_v13 = vld [vmem:[%s602_s1 + $0x54] sm:$0xf0]  ;;  %v386_v14 = vld [vmem:[%s602_s1 + $0x54] sm:$0xf]  ;;  %v352_v15 = vld [vmem:[%s602_s1 + $0x58] sm:$0xf0] }
   0x5   :  { %179 = vmatpush.bf16.msra.mxu1 %v371_v7  ;;  %400 = vmatpush.bf16.msra.mxu3 %v371_v7  ;;  %v351_v16 = vor.u32 %v387_v13, %v350_v12  ;;  %v355_v17 = vor.u32 %v386_v14, %v352_v15  ;;  %v342_v18 = vld [vmem:[%s602_s1 + $0x40] sm:$0xf]  ;;  %v385_v19 = vld [vmem:[%s602_s1 + $0x44] sm:$0xf0]  ;;  %v384_v20 = vld [vmem:[%s602_s1 + $0x44] sm:$0xf] }
   0x6   :  { %v344_v21 = vld [vmem:[%s602_s1 + $0x48] sm:$0xf0]  ;;  %v343_v22 = vor.u32 %v385_v19, %v342_v18  ;;  %v334_v24 = vld [vmem:[%s602_s1 + $0x30] sm:$0xf]  ;;  %v383_v25 = vld [vmem:[%s602_s1 + $0x34] sm:$0xf0] }
   0x7   :  { %v347_v23 = vor.u32 %v384_v20, %v344_v21  ;;  %v382_v26 = vld [vmem:[%s602_s1 + $0x34] sm:$0xf]  ;;  %v336_v27 = vld [vmem:[%s602_s1 + $0x38] sm:$0xf0]  ;;  %v335_v28 = vor.u32 %v383_v25, %v334_v24  ;;  %v326_v30 = vld [vmem:[%s602_s1 + $0x20] sm:$0xf] }
   0x8   :  { %151 = vmatpush.bf16.msra.mxu0 %v359_v10  ;;  %393 = vmatpush.bf16.msra.mxu2 %v359_v10  ;;  %v339_v29 = vor.u32 %v382_v26, %v336_v27  ;;  %v381_v31 = vld [vmem:[%s602_s1 + $0x24] sm:$0xf0]  ;;  %v380_v32 = vld [vmem:[%s602_s1 + $0x24] sm:$0xf]  ;;  %v328_v33 = vld [vmem:[%s602_s1 + $0x28] sm:$0xf0] }
   0x9   :  { %180 = vmatpush.bf16.msra.mxu1 %v363_v11  ;;  %401 = vmatpush.bf16.msra.mxu3 %v363_v11  ;;  %v327_v34 = vor.u32 %v381_v31, %v326_v30  ;;  %v331_v35 = vor.u32 %v380_v32, %v328_v33  ;;  %v318_v36 = vld [vmem:[%s602_s1 + $0x10] sm:$0xf]  ;;  %v379_v37 = vld [vmem:[%s602_s1 + $0x14] sm:$0xf0]  ;;  %v378_v38 = vld [vmem:[%s602_s1 + $0x14] sm:$0xf] }
   0xa   :  { %v320_v39 = vld [vmem:[%s602_s1 + $0x18] sm:$0xf0]  ;;  %v319_v40 = vor.u32 %v379_v37, %v318_v36  ;;  %v310_v42 = vld [vmem:[%s602_s1] sm:$0xf]  ;;  %v377_v43 = vld [vmem:[%s602_s1 + $0x4] sm:$0xf0] }
   0xb   :  { %v323_v41 = vor.u32 %v378_v38, %v320_v39  ;;  %v376_v44 = vld [vmem:[%s602_s1 + $0x4] sm:$0xf]  ;;  %v312_v45 = vld [vmem:[%s602_s1 + $0x8] sm:$0xf0]  ;;  %v311_v46 = vor.u32 %v377_v43, %v310_v42  ;;  %v374_v49 = vld [vmem:[%s603_s0 + $0x10] sm:$0xff] }
   0xc   :  { %152 = vmatpush.bf16.msra.mxu0 %v351_v16  ;;  %394 = vmatpush.bf16.msra.mxu2 %v351_v16  ;;  %v315_v47 = vor.u32 %v376_v44, %v312_v45  ;;  %v372_v48 = vld [vmem:[%s603_s0] sm:$0xff]  ;;  %v373_v50 = vld [vmem:[%s603_s0 + $0x8] sm:$0xff]  ;;  %v375_v51 = vld [vmem:[%s603_s0 + $0x18] sm:$0xff] }
   0xd   :  { %181 = vmatpush.bf16.msra.mxu1 %v355_v17  ;;  %402 = vmatpush.bf16.msra.mxu3 %v355_v17 }
  0x10   :  { %153 = vmatpush.bf16.msra.mxu0 %v343_v22  ;;  %395 = vmatpush.bf16.msra.mxu2 %v343_v22 }
  0x11   :  { %182 = vmatpush.bf16.msra.mxu1 %v347_v23  ;;  %403 = vmatpush.bf16.msra.mxu3 %v347_v23 }
  0x14   :  { %154 = vmatpush.bf16.msra.mxu0 %v335_v28  ;;  %396 = vmatpush.bf16.msra.mxu2 %v335_v28 }
  0x15   :  { %183 = vmatpush.bf16.msra.mxu1 %v339_v29  ;;  %404 = vmatpush.bf16.msra.mxu3 %v339_v29 }
  0x18   :  { %155 = vmatpush.bf16.msra.mxu0 %v327_v34  ;;  %397 = vmatpush.bf16.msra.mxu2 %v327_v34 }
  0x19   :  { %184 = vmatpush.bf16.msra.mxu1 %v331_v35  ;;  %405 = vmatpush.bf16.msra.mxu3 %v331_v35 }
  0x1c   :  { %156 = vmatpush.bf16.msra.mxu0 %v319_v40  ;;  %398 = vmatpush.bf16.msra.mxu2 %v319_v40 }
  0x1d   :  { %185 = vmatpush.bf16.msra.mxu1 %v323_v41  ;;  %406 = vmatpush.bf16.msra.mxu3 %v323_v41 }
  0x20   :  { %157 = vmatpush.bf16.msra.mxu0 %v311_v46  ;;  %399 = vmatpush.bf16.msra.mxu2 %v311_v46 }
  0x21   :  { %186 = vmatpush.bf16.msra.mxu1 %v315_v47  ;;  %407 = vmatpush.bf16.msra.mxu3 %v315_v47 }
  0x23   :  { %158 = vmatmul.bf16.vlgmr.msra.gmra.mxu0 %v372_v48  ;;  %168 = vmatmul.bf16.vlgmr.msra.gmra.mxu2 %v374_v49 }
  0x24   :  { %187 = vmatmul.bf16.vlgmr.msra.gmra.mxu1 %v372_v48  ;;  %197 = vmatmul.bf16.vlgmr.msra.gmra.mxu3 %v374_v49 }
  0x33   :  { %163 = vmatmul.bf16.gmra.mxu0 %v373_v50  ;;  %173 = vmatmul.bf16.gmra.mxu2 %v375_v51 }
  0x34   :  { %192 = vmatmul.bf16.gmra.mxu1 %v373_v50  ;;  %202 = vmatmul.bf16.gmra.mxu3 %v375_v51 }
  0xa0   :  { %v159_v52 = vpop.f32.mrf.mxu0 }
  0xa1   :  { %208 = vst [vmem:[%s604_s2] sm:$0xff] %v159_v52  ;;  %v188_v53 = vpop.f32.mrf.mxu1  ;;  %v246_v0 = vmul.f32 %v159_v52, %v159_v52 }
  0xa2   :  { %209 = vst [vmem:[%s604_s2 + $0x8] sm:$0xff] %v188_v53  ;;  %v247_v3 = vmul.f32 %v188_v53, %v188_v53 }
  0xa6   :  { %v169_v54 = vpop.f32.mrf.mxu2 }
  0xa7   :  { %216 = vst [vmem:[%s604_s2 + $0x40] sm:$0xff] %v169_v54  ;;  %v198_v55 = vpop.f32.mrf.mxu3  ;;  %v254_v20 = vmul.f32 %v169_v54, %v169_v54 }
  0xa8   :  { %217 = vst [vmem:[%s604_s2 + $0x48] sm:$0xff] %v198_v55  ;;  %v161_v56 = vpop.f32.mrf.mxu0  ;;  %v255_v23 = vmul.f32 %v198_v55, %v198_v55 }
  0xa9   :  { %210 = vst [vmem:[%s604_s2 + $0x10] sm:$0xff] %v161_v56  ;;  %v190_v57 = vpop.f32.mrf.mxu1  ;;  %v248_v62 = vmul.f32 %v161_v56, %v161_v56  ;;  %v226_v1 = vadd.f32 %v161_v56, %v159_v52 }
  0xaa   :  { %211 = vst [vmem:[%s604_s2 + $0x18] sm:$0xff] %v190_v57  ;;  %v249_v63 = vmul.f32 %v190_v57, %v190_v57  ;;  %v233_v4 = vadd.f32 %v190_v57, %v188_v53 }
  0xab   :  { %v262_v7 = vadd.f32 %v248_v62, %v246_v0 }
  0xac   :  { %v269_v10 = vadd.f32 %v249_v63, %v247_v3 }
  0xae   :  { %v171_v58 = vpop.f32.mrf.mxu2 }
  0xaf   :  { %218 = vst [vmem:[%s604_s2 + $0x50] sm:$0xff] %v171_v58  ;;  %v200_v59 = vpop.f32.mrf.mxu3  ;;  %v256_v26 = vmul.f32 %v171_v58, %v171_v58 }
  0xb0   :  { %219 = vst [vmem:[%s604_s2 + $0x58] sm:$0xff] %v200_v59  ;;  %v164_v60 = vpop.f32.mrf.mxu0  ;;  %v257_v29 = vmul.f32 %v200_v59, %v200_v59 }
  0xb1   :  { %212 = vst [vmem:[%s604_s2 + $0x20] sm:$0xff] %v164_v60  ;;  %v193_v61 = vpop.f32.mrf.mxu1  ;;  %v250_v2 = vmul.f32 %v164_v60, %v164_v60  ;;  %v227_v8 = vadd.f32 %v226_v1, %v164_v60 }
  0xb2   :  { %213 = vst [vmem:[%s604_s2 + $0x28] sm:$0xff] %v193_v61  ;;  %v251_v5 = vmul.f32 %v193_v61, %v193_v61  ;;  %v234_v11 = vadd.f32 %v233_v4, %v193_v61 }
  0xb3   :  { %v263_v13 = vadd.f32 %v262_v7, %v250_v2 }
  0xb4   :  { %v270_v17 = vadd.f32 %v269_v10, %v251_v5 }
  0xb6   :  { %v174_v6 = vpop.f32.mrf.mxu2 }
  0xb7   :  { %220 = vst [vmem:[%s604_s2 + $0x60] sm:$0xff] %v174_v6  ;;  %v203_v9 = vpop.f32.mrf.mxu3  ;;  %v258_v33 = vmul.f32 %v174_v6, %v174_v6 }
  0xb8   :  { %221 = vst [vmem:[%s604_s2 + $0x68] sm:$0xff] %v203_v9  ;;  %v166_v12 = vpop.f32.mrf.mxu0  ;;  %v259_v37 = vmul.f32 %v203_v9, %v203_v9 }
  0xb9   :  { %214 = vst [vmem:[%s604_s2 + $0x30] sm:$0xff] %v166_v12  ;;  %v228_v14 = vadd.f32 %v227_v8, %v166_v12  ;;  %v252_v15 = vmul.f32 %v166_v12, %v166_v12  ;;  %v195_v16 = vpop.f32.mrf.mxu1 }
  0xba   :  { %215 = vst [vmem:[%s604_s2 + $0x38] sm:$0xff] %v195_v16  ;;  %v235_v18 = vadd.f32 %v234_v11, %v195_v16  ;;  %v253_v19 = vmul.f32 %v195_v16, %v195_v16 }
  0xbb   :  { %v229_v21 = vadd.f32 %v228_v14, %v169_v54  ;;  %v264_v22 = vadd.f32 %v263_v13, %v252_v15 }
  0xbc   :  { %v236_v24 = vadd.f32 %v235_v18, %v198_v55  ;;  %v271_v25 = vadd.f32 %v270_v17, %v253_v19 }
  0xbd   :  { %v265_v27 = vadd.f32 %v264_v22, %v254_v20  ;;  %v230_v28 = vadd.f32 %v229_v21, %v171_v58 }
  0xbe   :  { %v272_v30 = vadd.f32 %v271_v25, %v255_v23  ;;  %v176_v31 = vpop.f32.mrf.mxu2  ;;  %v237_v32 = vadd.f32 %v236_v24, %v200_v59 }
  0xbf   :  { %222 = vst [vmem:[%s604_s2 + $0x70] sm:$0xff] %v176_v31  ;;  %v231_v34 = vadd.f32 %v230_v28, %v174_v6  ;;  %v266_v35 = vadd.f32 %v265_v27, %v256_v26  ;;  %v205_v36 = vpop.f32.mrf.mxu3  ;;  %v260_v41 = vmul.f32 %v176_v31, %v176_v31 }
  0xc0   :  { %223 = vst [vmem:[%s604_s2 + $0x78] sm:$0xff] %v205_v36  ;;  %v238_v38 = vadd.f32 %v237_v32, %v203_v9  ;;  %v273_v39 = vadd.f32 %v272_v30, %v257_v29  ;;  %v261_v44 = vmul.f32 %v205_v36, %v205_v36 }
  0xc1   :  { %v232_v40 = vadd.f32 %v231_v34, %v176_v31  ;;  %v267_v42 = vadd.f32 %v266_v35, %v258_v33 }
  0xc2   :  { %v239_v43 = vadd.f32 %v238_v38, %v205_v36  ;;  %v274_v45 = vadd.f32 %v273_v39, %v259_v37 }
  0xc3   :  { %v268_v46 = vadd.f32 %v267_v42, %v260_v41  ;;  %242 = vst [vmem:[%s605_s3] sm:$0xff] %v232_v40 }
  0xc4   :  { %v275_v47 = vadd.f32 %v274_v45, %v261_v44  ;;  %243 = vst [vmem:[%s605_s3 + $0x8] sm:$0xff] %v239_v43 }
  0xc5   :  { %278 = vst [vmem:[%s606_s4] sm:$0xff] %v268_v46 }
  0xc6   :  { %279 = vst [vmem:[%s606_s4 + $0x8] sm:$0xff] %v275_v47 }

</bundles_post_ra>
